<compile_context>
chip_gen: v7x
topology: tpu7x:2x2x1
jax: 0.10.0
libtpu: 0.0.40
codegen_flags: <defaults>
</compile_context>

<pallas_src>
import jax
import jax.numpy as jnp
from jax.experimental import pallas as pl
from jax.experimental.pallas import tpu as pltpu


# ----------------------------------------------------------------------------
# Model configuration (synthetic G / D)
# ----------------------------------------------------------------------------
Z_DIM = 32
SHARED_DIM = 32
N_CLASSES = 8
C, H, W = 4, 16, 16
CHW = C * H * W
D_HIDDEN = 128
N_PAD = 128                      # lane-dense discriminator output width
MXU_DTYPE = jnp.bfloat16         # MXU operand dtype (f32 accumulation / epilogue)
ROW_ALIGN = 16                   # bf16 vreg packs [16,128]: 16-row sublane alignment
G_FP16 = False
D_FP16 = False


# ----------------------------------------------------------------------------
# Shared math helpers (used inside the Pallas kernels and as the pure-JAX
# reference in __main__ — they only use jnp ops).
# ----------------------------------------------------------------------------
def _generator(z, onehot_y, g_class, g_w_z, g_b):
    """tanh(z @ g_w_z + onehot_y @ g_class + g_b); g_class = shared @ g_w_y (folded)."""
    pre = (jnp.dot(z.astype(MXU_DTYPE), g_w_z, preferred_element_type=jnp.float32)
           + jnp.dot(onehot_y, g_class, preferred_element_type=jnp.float32)
           + g_b)
    return jnp.tanh(pre)


def _discriminator(x_flat_bf16, onehot_y, d_w1, d_b1, d_w2, d_b2, d_proj):
    """relu(x @ W1 + b1) @ W2 + b2 + onehot @ proj  (projection conditioning), N=128."""
    h = jnp.maximum(
        jnp.dot(x_flat_bf16, d_w1, preferred_element_type=jnp.float32) + d_b1, 0.0)
    out = jnp.dot(h.astype(MXU_DTYPE), d_w2, preferred_element_type=jnp.float32) + d_b2
    return out + jnp.dot(onehot_y, d_proj, preferred_element_type=jnp.float32)


# ----------------------------------------------------------------------------
# Fused Pallas kernels
# ----------------------------------------------------------------------------
def _gd_fake_kernel(oh_ref, z_ref,
                    gcls_ref, gwz_ref, gb_ref,
                    w1_ref, b1_ref, w2_ref, b2_ref, proj_ref,
                    dfake_ref):
    """x is None, return_G_z=False: G -> D(fake). G_z never leaves VMEM."""
    oh = oh_ref[...]
    g_z = _generator(z_ref[...], oh, gcls_ref[...], gwz_ref[...], gb_ref[...])
    dfake_ref[...] = _discriminator(g_z.astype(MXU_DTYPE), oh,
                                    w1_ref[...], b1_ref[...],
                                    w2_ref[...], b2_ref[...], proj_ref[...])


def _gd_fake_gz_kernel(oh_ref, z_ref,
                       gcls_ref, gwz_ref, gb_ref,
                       w1_ref, b1_ref, w2_ref, b2_ref, proj_ref,
                       gz_ref, dfake_ref):
    """x is None, return_G_z=True: same as above but also emits flat G_z."""
    oh = oh_ref[...]
    g_z = _generator(z_ref[...], oh, gcls_ref[...], gwz_ref[...], gb_ref[...])
    # TODO(synk): if G_FP16 != D_FP16 the torch module casts G_z between G and D;
    # both flags are False for this config so no in-kernel cast is emitted.
    gz_ref[...] = g_z
    dfake_ref[...] = _discriminator(g_z.astype(MXU_DTYPE), oh,
                                    w1_ref[...], b1_ref[...],
                                    w2_ref[...], b2_ref[...], proj_ref[...])


def _gd_joint_kernel(oh_ref, z_ref, xr_ref,
                     gcls_ref, gwz_ref, gb_ref,
                     w1_ref, b1_ref, w2_ref, b2_ref, proj_ref,
                     dout_ref, din_ref):
    """x is not None: G -> stack [G_z | x] in a bf16 VMEM scratch -> ONE
    discriminator pass over the combined batch (single MXU fill/drain)."""
    mf = z_ref.shape[0]
    mr = xr_ref.shape[0]
    oh = oh_ref[...]                                   # (mf+mr, N_CLASSES) bf16
    g_z = _generator(z_ref[...], oh[:mf], gcls_ref[...], gwz_ref[...], gb_ref[...])
    din_ref[0:mf, :] = g_z.astype(MXU_DTYPE)
    din_ref[mf:mf + mr, :] = xr_ref[...].astype(MXU_DTYPE)
    dout_ref[...] = _discriminator(din_ref[...], oh,
                                   w1_ref[...], b1_ref[...],
                                   w2_ref[...], b2_ref[...], proj_ref[...])


# ----------------------------------------------------------------------------
# pallas_call wrappers
# ----------------------------------------------------------------------------
def _full_spec(shape):
    nd = len(shape)
    return pl.BlockSpec(shape, lambda i, nd=nd: (0,) * nd)


_WEIGHT_SHAPES = [
    (N_CLASSES, CHW),          # g_class (bf16, folded shared @ g_w_y)
    (Z_DIM, CHW),              # g_w_z   (bf16)
    (1, CHW),                  # g_b     (f32)
    (CHW, D_HIDDEN),           # d_w1    (bf16)
    (1, D_HIDDEN),             # d_b1    (f32)
    (D_HIDDEN, N_PAD),         # d_w2    (bf16, N padded to 128)
    (1, N_PAD),                # d_b2    (f32, padded)
    (N_CLASSES, N_PAD),        # d_proj  (bf16, padded)
]


def _weight_args(pp):
    return (pp["g_class"], pp["g_w_z"], pp["g_b"],
            pp["d_w1"], pp["d_b1"], pp["d_w2"], pp["d_b2"], pp["d_proj"])


def fused_gd_fake(pp, z_pad, oh_pad, want_gz):
    mf = z_pad.shape[0]
    if want_gz:
        kernel = _gd_fake_gz_kernel
        out_shape = (jax.ShapeDtypeStruct((mf, CHW), jnp.float32),
                     jax.ShapeDtypeStruct((mf, N_PAD), jnp.float32))
        out_specs = (_full_spec((mf, CHW)), _full_spec((mf, N_PAD)))
    else:
        kernel = _gd_fake_kernel
        out_shape = jax.ShapeDtypeStruct((mf, N_PAD), jnp.float32)
        out_specs = _full_spec((mf, N_PAD))
    return pl.pallas_call(
        kernel,
        out_shape=out_shape,
        grid=(1,),
        in_specs=[_full_spec((mf, N_CLASSES)), _full_spec((mf, Z_DIM))]
                + [_full_spec(s) for s in _WEIGHT_SHAPES],
        out_specs=out_specs,
        compiler_params=pltpu.CompilerParams(dimension_semantics=("arbitrary",)),
    )(oh_pad, z_pad, *_weight_args(pp))


def fused_gd_joint(pp, z_pad, x_pad, oh_all):
    mf = z_pad.shape[0]
    mr = x_pad.shape[0]
    m = mf + mr
    return pl.pallas_call(
        _gd_joint_kernel,
        out_shape=jax.ShapeDtypeStruct((m, N_PAD), jnp.float32),
        grid=(1,),
        in_specs=[_full_spec((m, N_CLASSES)), _full_spec((mf, Z_DIM)),
                  _full_spec((mr, CHW))]
                + [_full_spec(s) for s in _WEIGHT_SHAPES],
        out_specs=_full_spec((m, N_PAD)),
        scratch_shapes=[pltpu.VMEM((m, CHW), MXU_DTYPE)],   # stacked [G_z | x]
        compiler_params=pltpu.CompilerParams(dimension_semantics=("arbitrary",)),
    )(oh_all, z_pad, x_pad, *_weight_args(pp))


# ----------------------------------------------------------------------------
# Synthetic parameters + G_D forward semantics
# ----------------------------------------------------------------------------
def init_params(key):
    ks = jax.random.split(key, 5)
    scale = 0.02
    return {
        # G.shared: class embedding used to condition the generator
        "g_shared": scale * jax.random.normal(ks[0], (N_CLASSES, SHARED_DIM), jnp.float32),
        # G linear: [z | shared(y)] -> C*H*W image (tanh)
        "g_w": scale * jax.random.normal(ks[1], (Z_DIM + SHARED_DIM, CHW), jnp.float32),
        "g_b": jnp.zeros((1, CHW), jnp.float32),
        # D: flatten(NCHW) -> hidden -> N_CLASSES logits, + class projection bias
        "d_w1": scale * jax.random.normal(ks[2], (CHW, D_HIDDEN), jnp.float32),
        "d_b1": jnp.zeros((1, D_HIDDEN), jnp.float32),
        "d_w2": scale * jax.random.normal(ks[3], (D_HIDDEN, N_CLASSES), jnp.float32),
        "d_b2": jnp.zeros((1, N_CLASSES), jnp.float32),
        "d_proj": scale * jax.random.normal(ks[4], (N_CLASSES, N_CLASSES), jnp.float32),
    }


def prepare_params(params):
    """One-time layout prep: fold g_shared into g_w_y (g_class), pad D head to
    128 lanes, cast every MXU operand (including d_proj) to bf16."""
    npad = N_PAD - N_CLASSES
    g_class = jnp.dot(params["g_shared"], params["g_w"][Z_DIM:],
                      preferred_element_type=jnp.float32)
    return {
        "g_class": g_class.astype(MXU_DTYPE),
        "g_w_z": params["g_w"][:Z_DIM].astype(MXU_DTYPE),
        "g_b": params["g_b"],
        "d_w1": params["d_w1"].astype(MXU_DTYPE),
        "d_b1": params["d_b1"],
        "d_w2": jnp.pad(params["d_w2"], ((0, 0), (0, npad))).astype(MXU_DTYPE),
        "d_b2": jnp.pad(params["d_b2"], ((0, 0), (0, npad))),
        "d_proj": jnp.pad(params["d_proj"], ((0, 0), (0, npad))).astype(MXU_DTYPE),
    }


def _round_up(n, m):
    return ((n + m - 1) // m) * m


def _pad_rows(a, rows):
    extra = rows - a.shape[0]
    if extra == 0:
        return a
    return jnp.pad(a, ((0, extra),) + ((0, 0),) * (a.ndim - 1))


def _g_d_forward(pp, z, gy, x=None, dy=None,
                 train_G=False, return_G_z=False, split_D=False):
    """Mirrors torch G_D.forward semantics on the synthetic G/D."""
    # TODO(synk): torch.set_grad_enabled(train_G) is an autodiff concern with no
    # forward-pass effect; omitted.
    del train_G
    b_fake = z.shape[0]
    mf = _round_up(b_fake, ROW_ALIGN)              # bf16 sublane-pair aligned batch
    z_pad = _pad_rows(z, mf)
    # One-hot built by XLA in the jitted wrapper (bf16: 0/1 exact); padded rows
    # are all-zero one-hots (class conditioning contributes nothing there).
    oh_f_pad = _pad_rows(
        jax.nn.one_hot(gy.astype(jnp.int32), N_CLASSES, dtype=MXU_DTYPE), mf)

    if x is None:
        if return_G_z:
            gz_pad, dfake_pad = fused_gd_fake(pp, z_pad, oh_f_pad, want_gz=True)
            d_fake = dfake_pad[:b_fake, :N_CLASSES]
            # Only materialize the NCHW layout when G_z is actually requested.
            g_z = gz_pad[:b_fake].reshape(b_fake, C, H, W)
            if G_FP16 and not D_FP16:
                g_z = g_z.astype(jnp.float32)
            if D_FP16 and not G_FP16:
                g_z = g_z.astype(jnp.float16)
            return d_fake, g_z
        # return_G_z=False: kernel variant that never writes G_z back to HBM.
        dfake_pad = fused_gd_fake(pp, z_pad, oh_f_pad, want_gz=False)
        return dfake_pad[:b_fake, :N_CLASSES]

    # x is not None: both the joint path and split_D evaluate the same stateless
    # per-sample D on the fake and real batches, so they are numerically
    # identical and share one fused kernel (weights DMA'd once, one D pass).
    del split_D
    b_real = x.shape[0]
    mr = _round_up(b_real, ROW_ALIGN)
    x_pad = _pad_rows(x.reshape(b_real, CHW), mr)
    oh_r_pad = _pad_rows(
        jax.nn.one_hot(dy.astype(jnp.int32), N_CLASSES, dtype=MXU_DTYPE), mr)
    oh_all = jnp.concatenate([oh_f_pad, oh_r_pad], axis=0)
    dout_pad = fused_gd_joint(pp, z_pad, x_pad, oh_all)
    return (dout_pad[:b_fake, :N_CLASSES],
            dout_pad[mf:mf + b_real, :N_CLASSES])


# One jitted executable per static variant: pads + fused kernel + slices all
# live in a single dispatch.
g_d_forward = jax.jit(_g_d_forward,
                      static_argnames=("train_G", "return_G_z", "split_D"))


# ----------------------------------------------------------------------------
if __name__ == "__main__":
    key = jax.random.PRNGKey(0)
    kp, kz, kx, ky1, ky2 = jax.random.split(key, 5)
    params = init_params(kp)
    pp = prepare_params(params)

    B_fake, B_real = 2, 2
    z = jax.random.normal(kz, (B_fake, Z_DIM), jnp.float32)
    gy = jax.random.randint(ky1, (B_fake,), 0, N_CLASSES)
    x = jax.random.normal(kx, (B_real, C, H, W), jnp.float32)   # layout: NCHW
    dy = jax.random.randint(ky2, (B_real,), 0, N_CLASSES)

    # Joint path (default): single fused kernel, one stacked discriminator pass.
    D_fake, D_real = g_d_forward(pp, z, gy, x=x, dy=dy)
    jax.block_until_ready((D_fake, D_real))
    assert D_fake.shape == (B_fake, N_CLASSES)
    assert D_real.shape == (B_real, N_CLASSES)

    # split_D path (same fused kernel), fake-only path, and return_G_z path.
    D_fake2, D_real2 = g_d_forward(pp, z, gy, x=x, dy=dy, split_D=True)
    D_only = g_d_forward(pp, z, gy)
    D_out, G_z = g_d_forward(pp, z, gy, return_G_z=True)
    jax.block_until_ready((D_fake2, D_real2, D_only, D_out, G_z))
    assert G_z.shape == (B_fake, C, H, W)
    assert bool(jnp.allclose(D_fake, D_fake2)) and bool(jnp.allclose(D_real, D_real2))
    assert bool(jnp.allclose(D_only, D_out))

    # Pure-JAX reference through the same math (no Pallas), correctness check.
    oh_f = jax.nn.one_hot(gy.astype(jnp.int32), N_CLASSES, dtype=MXU_DTYPE)
    oh_r = jax.nn.one_hot(dy.astype(jnp.int32), N_CLASSES, dtype=MXU_DTYPE)
    gz_ref = _generator(z, oh_f, pp["g_class"], pp["g_w_z"], pp["g_b"])
    dfake_ref = _discriminator(gz_ref.astype(MXU_DTYPE), oh_f, pp["d_w1"], pp["d_b1"],
                               pp["d_w2"], pp["d_b2"], pp["d_proj"])[:, :N_CLASSES]
    dreal_ref = _discriminator(x.reshape(B_real, CHW).astype(MXU_DTYPE), oh_r,
                               pp["d_w1"], pp["d_b1"],
                               pp["d_w2"], pp["d_b2"], pp["d_proj"])[:, :N_CLASSES]
    assert bool(jnp.allclose(D_fake, dfake_ref, atol=1e-2, rtol=1e-2))
    assert bool(jnp.allclose(D_real, dreal_ref, atol=1e-2, rtol=1e-2))
    assert bool(jnp.allclose(D_out, dfake_ref, atol=1e-2, rtol=1e-2))
    assert bool(jnp.allclose(G_z.reshape(B_fake, CHW), gz_ref, atol=1e-2, rtol=1e-2))

    print("KERNEL_OK")
</pallas_src>

<mosaic_0001>
module attributes {stable_mosaic.version = 11 : i64} {
  func.func @_gd_joint_kernel(%arg0: i32, %arg1: memref<32x8xbf16, #tpu.memory_space<vmem>>, %arg2: memref<16x32xf32, #tpu.memory_space<vmem>>, %arg3: memref<16x1024xf32, #tpu.memory_space<vmem>>, %arg4: memref<8x1024xbf16, #tpu.memory_space<vmem>>, %arg5: memref<32x1024xbf16, #tpu.memory_space<vmem>>, %arg6: memref<1x1024xf32, #tpu.memory_space<vmem>>, %arg7: memref<1024x128xbf16, #tpu.memory_space<vmem>>, %arg8: memref<1x128xf32, #tpu.memory_space<vmem>>, %arg9: memref<128x128xbf16, #tpu.memory_space<vmem>>, %arg10: memref<1x128xf32, #tpu.memory_space<vmem>>, %arg11: memref<8x128xbf16, #tpu.memory_space<vmem>>, %arg12: memref<32x128xf32, #tpu.memory_space<vmem>>, %arg13: memref<32x1024xbf16, #tpu.memory_space<vmem>>) attributes {dimension_semantics = [#tpu.dimension_semantics<arbitrary>], iteration_bounds = array<i64: 1>, scalar_prefetch = 0 : i64, scratch_operands = 1 : i64, tpu.core_type = #tpu.core_type<tc>, window_params = [{pipeline_mode = #tpu.pipeline_mode<synchronous>, transform_indices = @transform_0, window_bounds = array<i64: 32, 8>}, {pipeline_mode = #tpu.pipeline_mode<synchronous>, transform_indices = @transform_1, window_bounds = array<i64: 16, 32>}, {pipeline_mode = #tpu.pipeline_mode<synchronous>, transform_indices = @transform_2, window_bounds = array<i64: 16, 1024>}, {pipeline_mode = #tpu.pipeline_mode<synchronous>, transform_indices = @transform_3, window_bounds = array<i64: 8, 1024>}, {pipeline_mode = #tpu.pipeline_mode<synchronous>, transform_indices = @transform_4, window_bounds = array<i64: 32, 1024>}, {pipeline_mode = #tpu.pipeline_mode<synchronous>, transform_indices = @transform_5, window_bounds = array<i64: 1, 1024>}, {pipeline_mode = #tpu.pipeline_mode<synchronous>, transform_indices = @transform_6, window_bounds = array<i64: 1024, 128>}, {pipeline_mode = #tpu.pipeline_mode<synchronous>, transform_indices = @transform_7, window_bounds = array<i64: 1, 128>}, {pipeline_mode = #tpu.pipeline_mode<synchronous>, transform_indices = @transform_8, window_bounds = array<i64: 128, 128>}, {pipeline_mode = #tpu.pipeline_mode<synchronous>, transform_indices = @transform_9, window_bounds = array<i64: 1, 128>}, {pipeline_mode = #tpu.pipeline_mode<synchronous>, transform_indices = @transform_10, window_bounds = array<i64: 8, 128>}, {pipeline_mode = #tpu.pipeline_mode<synchronous>, transform_indices = @transform_11, window_bounds = array<i64: 32, 128>}]} {
    %c0 = arith.constant 0 : index
    %c0_0 = arith.constant 0 : index
    %0 = vector.load %arg1[%c0, %c0_0] : memref<32x8xbf16, #tpu.memory_space<vmem>>, vector<32x8xbf16>
    %c0_1 = arith.constant 0 : index
    %c0_2 = arith.constant 0 : index
    %1 = vector.load %arg2[%c0_1, %c0_2] : memref<16x32xf32, #tpu.memory_space<vmem>>, vector<16x32xf32>
    %2 = vector.extract_strided_slice %0 {offsets = [0, 0], sizes = [16, 8], strides = [1, 1]} : vector<32x8xbf16> to vector<16x8xbf16>
    %c0_3 = arith.constant 0 : index
    %c0_4 = arith.constant 0 : index
    %3 = vector.load %arg4[%c0_3, %c0_4] : memref<8x1024xbf16, #tpu.memory_space<vmem>>, vector<8x1024xbf16>
    %c0_5 = arith.constant 0 : index
    %c0_6 = arith.constant 0 : index
    %4 = vector.load %arg5[%c0_5, %c0_6] : memref<32x1024xbf16, #tpu.memory_space<vmem>>, vector<32x1024xbf16>
    %c0_7 = arith.constant 0 : index
    %c0_8 = arith.constant 0 : index
    %5 = vector.load %arg6[%c0_7, %c0_8] : memref<1x1024xf32, #tpu.memory_space<vmem>>, vector<1x1024xf32>
    %6 = arith.truncf %1 : vector<16x32xf32> to vector<16x32xbf16>
    %cst = arith.constant dense<0.000000e+00> : vector<16x1024xf32>
    %7 = tpu.matmul %6, %4, %cst {dimension_numbers = #tpu.dot_dimension_numbers<[1], [0], [0], [1], [0, 0, 1, 1], [], []>} : vector<16x32xbf16>, vector<32x1024xbf16>, vector<16x1024xf32> -> vector<16x1024xf32>
    %cst_9 = arith.constant dense<0.000000e+00> : vector<16x1024xf32>
    %8 = tpu.matmul %2, %3, %cst_9 {dimension_numbers = #tpu.dot_dimension_numbers<[1], [0], [0], [1], [0, 0, 1, 1], [], []>} : vector<16x8xbf16>, vector<8x1024xbf16>, vector<16x1024xf32> -> vector<16x1024xf32>
    %9 = arith.addf %7, %8 : vector<16x1024xf32>
    %10 = vector.broadcast %5 : vector<1x1024xf32> to vector<16x1024xf32>
    %11 = arith.addf %9, %10 : vector<16x1024xf32>
    %12 = math.tanh %11 : vector<16x1024xf32>
    %13 = arith.truncf %12 : vector<16x1024xf32> to vector<16x1024xbf16>
    %c0_10 = arith.constant 0 : index
    %c0_11 = arith.constant 0 : index
    %14 = vector.load %arg13[%c0_10, %c0_11] : memref<32x1024xbf16, #tpu.memory_space<vmem>>, vector<16x1024xbf16>
    tpu.vector_store %arg13[%c0_10, %c0_11], %13 {strides = array<i32>} : memref<32x1024xbf16, #tpu.memory_space<vmem>>, vector<16x1024xbf16>,
    %c0_12 = arith.constant 0 : index
    %c0_13 = arith.constant 0 : index
    %15 = vector.load %arg3[%c0_12, %c0_13] : memref<16x1024xf32, #tpu.memory_space<vmem>>, vector<16x1024xf32>
    %16 = arith.truncf %15 : vector<16x1024xf32> to vector<16x1024xbf16>
    %c16 = arith.constant 16 : index
    %c0_14 = arith.constant 0 : index
    %17 = vector.load %arg13[%c16, %c0_14] : memref<32x1024xbf16, #tpu.memory_space<vmem>>, vector<16x1024xbf16>
    tpu.vector_store %arg13[%c16, %c0_14], %16 {strides = array<i32>} : memref<32x1024xbf16, #tpu.memory_space<vmem>>, vector<16x1024xbf16>,
    %c0_15 = arith.constant 0 : index
    %c0_16 = arith.constant 0 : index
    %18 = vector.load %arg13[%c0_15, %c0_16] : memref<32x1024xbf16, #tpu.memory_space<vmem>>, vector<32x1024xbf16>
    %c0_17 = arith.constant 0 : index
    %c0_18 = arith.constant 0 : index
    %19 = vector.load %arg7[%c0_17, %c0_18] : memref<1024x128xbf16, #tpu.memory_space<vmem>>, vector<1024x128xbf16>
    %c0_19 = arith.constant 0 : index
    %c0_20 = arith.constant 0 : index
    %20 = vector.load %arg8[%c0_19, %c0_20] : memref<1x128xf32, #tpu.memory_space<vmem>>, vector<1x128xf32>
    %c0_21 = arith.constant 0 : index
    %c0_22 = arith.constant 0 : index
    %21 = vector.load %arg9[%c0_21, %c0_22] : memref<128x128xbf16, #tpu.memory_space<vmem>>, vector<128x128xbf16>
    %c0_23 = arith.constant 0 : index
    %c0_24 = arith.constant 0 : index
    %22 = vector.load %arg10[%c0_23, %c0_24] : memref<1x128xf32, #tpu.memory_space<vmem>>, vector<1x128xf32>
    %c0_25 = arith.constant 0 : index
    %c0_26 = arith.constant 0 : index
    %23 = vector.load %arg11[%c0_25, %c0_26] : memref<8x128xbf16, #tpu.memory_space<vmem>>, vector<8x128xbf16>
    %cst_27 = arith.constant dense<0.000000e+00> : vector<32x128xf32>
    %24 = tpu.matmul %18, %19, %cst_27 {dimension_numbers = #tpu.dot_dimension_numbers<[1], [0], [0], [1], [0, 0, 1, 1], [], []>} : vector<32x1024xbf16>, vector<1024x128xbf16>, vector<32x128xf32> -> vector<32x128xf32>
    %25 = vector.broadcast %20 : vector<1x128xf32> to vector<32x128xf32>
    %26 = arith.addf %24, %25 : vector<32x128xf32>
    %cst_28 = arith.constant 0.000000e+00 : f32
    %27 = vector.broadcast %cst_28 : f32 to vector<32x128xf32>
    %28 = arith.maximumf %26, %27 : vector<32x128xf32>
    %29 = arith.truncf %28 : vector<32x128xf32> to vector<32x128xbf16>
    %cst_29 = arith.constant dense<0.000000e+00> : vector<32x128xf32>
    %30 = tpu.matmul %29, %21, %cst_29 {dimension_numbers = #tpu.dot_dimension_numbers<[1], [0], [0], [1], [0, 0, 1, 1], [], []>} : vector<32x128xbf16>, vector<128x128xbf16>, vector<32x128xf32> -> vector<32x128xf32>
    %31 = vector.broadcast %22 : vector<1x128xf32> to vector<32x128xf32>
    %32 = arith.addf %30, %31 : vector<32x128xf32>
    %cst_30 = arith.constant dense<0.000000e+00> : vector<32x128xf32>
    %33 = tpu.matmul %0, %23, %cst_30 {dimension_numbers = #tpu.dot_dimension_numbers<[1], [0], [0], [1], [0, 0, 1, 1], [], []>} : vector<32x8xbf16>, vector<8x128xbf16>, vector<32x128xf32> -> vector<32x128xf32>
    %34 = arith.addf %32, %33 : vector<32x128xf32>
    %c0_31 = arith.constant 0 : index
    %c0_32 = arith.constant 0 : index
    %35 = vector.load %arg12[%c0_31, %c0_32] : memref<32x128xf32, #tpu.memory_space<vmem>>, vector<32x128xf32>
    tpu.vector_store %arg12[%c0_31, %c0_32], %34 {strides = array<i32>} : memref<32x128xf32, #tpu.memory_space<vmem>>, vector<32x128xf32>,
    return
  }
  func.func @transform_0(%arg0: i32) -> (i32, i32) {
    %c0_i32 = arith.constant 0 : i32
    %c0_i32_0 = arith.constant 0 : i32
    %c0_i32_1 = arith.constant 0 : i32
    return %c0_i32, %c0_i32_0 : i32, i32
  }
  func.func @transform_1(%arg0: i32) -> (i32, i32) {
    %c0_i32 = arith.constant 0 : i32
    %c0_i32_0 = arith.constant 0 : i32
    %c0_i32_1 = arith.constant 0 : i32
    return %c0_i32, %c0_i32_0 : i32, i32
  }
  func.func @transform_2(%arg0: i32) -> (i32, i32) {
    %c0_i32 = arith.constant 0 : i32
    %c0_i32_0 = arith.constant 0 : i32
    %c0_i32_1 = arith.constant 0 : i32
    return %c0_i32, %c0_i32_0 : i32, i32
  }
  func.func @transform_3(%arg0: i32) -> (i32, i32) {
    %c0_i32 = arith.constant 0 : i32
    %c0_i32_0 = arith.constant 0 : i32
    %c0_i32_1 = arith.constant 0 : i32
    return %c0_i32, %c0_i32_0 : i32, i32
  }
  func.func @transform_4(%arg0: i32) -> (i32, i32) {
    %c0_i32 = arith.constant 0 : i32
    %c0_i32_0 = arith.constant 0 : i32
    %c0_i32_1 = arith.constant 0 : i32
    return %c0_i32, %c0_i32_0 : i32, i32
  }
  func.func @transform_5(%arg0: i32) -> (i32, i32) {
    %c0_i32 = arith.constant 0 : i32
    %c0_i32_0 = arith.constant 0 : i32
    %c0_i32_1 = arith.constant 0 : i32
    return %c0_i32, %c0_i32_0 : i32, i32
  }
  func.func @transform_6(%arg0: i32) -> (i32, i32) {
    %c0_i32 = arith.constant 0 : i32
    %c0_i32_0 = arith.constant 0 : i32
    %c0_i32_1 = arith.constant 0 : i32
    return %c0_i32, %c0_i32_0 : i32, i32
  }
  func.func @transform_7(%arg0: i32) -> (i32, i32) {
    %c0_i32 = arith.constant 0 : i32
    %c0_i32_0 = arith.constant 0 : i32
    %c0_i32_1 = arith.constant 0 : i32
    return %c0_i32, %c0_i32_0 : i32, i32
  }
  func.func @transform_8(%arg0: i32) -> (i32, i32) {
    %c0_i32 = arith.constant 0 : i32
    %c0_i32_0 = arith.constant 0 : i32
    %c0_i32_1 = arith.constant 0 : i32
    return %c0_i32, %c0_i32_0 : i32, i32
  }
  func.func @transform_9(%arg0: i32) -> (i32, i32) {
    %c0_i32 = arith.constant 0 : i32
    %c0_i32_0 = arith.constant 0 : i32
    %c0_i32_1 = arith.constant 0 : i32
    return %c0_i32, %c0_i32_0 : i32, i32
  }
  func.func @transform_10(%arg0: i32) -> (i32, i32) {
    %c0_i32 = arith.constant 0 : i32
    %c0_i32_0 = arith.constant 0 : i32
    %c0_i32_1 = arith.constant 0 : i32
    return %c0_i32, %c0_i32_0 : i32, i32
  }
  func.func @transform_11(%arg0: i32) -> (i32, i32) {
    %c0_i32 = arith.constant 0 : i32
    %c0_i32_0 = arith.constant 0 : i32
    %c0_i32_1 = arith.constant 0 : i32
    return %c0_i32, %c0_i32_0 : i32, i32
  }
}

</mosaic_0001>

<bundles_post_ra>
// kernel: _g_d_forward.1
= control target key start
LH: loop header
LB: loop body
LE: loop exit
PB: predicated region body
PF: predicated region fallthrough
CT: control target
= control target key end

     0   :  { %16 = vsyncpa [#allocation4], 0  ;;  %s2048_s17 = smov [#allocation3]   ;;  %s2348_s0 = inlined_call_operand.vmem [shape: bf16[32,8], index: 0, kind: input, shape index: {}]   ;;  %s2349_s1 = inlined_call_operand.vmem [shape: f32[16,32], index: 1, kind: input, shape index: {}]   ;;  %s2350_s2 = inlined_call_operand.vmem [shape: f32[16,1024], index: 2, kind: input, shape index: {}]   ;;  %s2351_s3 = inlined_call_operand.vmem [shape: bf16[8,1024], index: 3, kind: input, shape index: {}]   ;;  %s2352_s4 = inlined_call_operand.vmem [shape: bf16[32,1024], index: 4, kind: input, shape index: {}]   ;;  %s2353_s5 = inlined_call_operand.vmem [shape: f32[1,1024], index: 5, kind: input, shape index: {}]   ;;  %s2354_s6 = inlined_call_operand.hbm [shape: bf16[1024,128], index: 6, kind: input, shape index: {}]   ;;  %s2355_s7 = inlined_call_operand.vmem [shape: f32[1,128], index: 7, kind: input, shape index: {}]   ;;  %s2356_s8 = inlined_call_operand.vmem [shape: bf16[128,128], index: 8, kind: input, shape index: {}]   ;;  %s2357_s9 = inlined_call_operand.vmem [shape: f32[1,128], index: 9, kind: input, shape index: {}]   ;;  %s2358_s10 = inlined_call_operand.vmem [shape: bf16[8,128], index: 10, kind: input, shape index: {}]   ;;  %s2359_s11 = inlined_call_operand.vmem [shape: f32[32,128], index: 11, kind: output, shape index: {}]  }
   0x1   :  { %s34_s18 = sshll.u32 %s2048_s17, 4  ;;  %s2024_s21 = scalar_lea.hbm %s2354_s6, 8192  ;;  %s35_s18 = int_to_ptr.vmem [resolvable:$true] %s34_s18 }
   0x2   :  { %p2025_p0 = scmp.ne.s32.totalorder %s2354_s6, %s2024_s21  ;;  %p2028_p1 = scmp.lt.u32.totalorder %s2024_s21, %s2354_s6 }
   0x4   :  { %p2030_p2 = pnand %p2028_p1, %p2025_p0 }
   0x6   :  { %2033 = shalt.err (!%p2030_p2)
}
   0x7   :  { %s2034_s26 = scalar_lea.vmem %s35_s18, 8192  ;;  %p2039_p4 = scmp.lt.s32.totalorder %s35_s18, %s35_s18 }
   0x8   :  { %p2035_p3 = scmp.ne.s32.totalorder %s35_s18, %s2034_s26  ;;  %p2040_p5 = scmp.lt.s32.totalorder %s2034_s26, %s2034_s26 }
   0xa   :  { %p2041_p6 = por %p2040_p5, %p2039_p4 }
   0xc   :  { %p2042_p7 = pnand %p2041_p6, %p2035_p3 }
   0xe   :  { %2045 = shalt.err (!%p2042_p7)
}
   0xf   :  { %s2049_s27 = smov 64   ;;  %s2050_s28 = smov 4  }
  0x10   :  { %40 = dma.hbm_to_vmem [thread:$0]  %s2354_s6, 8192, %s35_s18, [#allocation4], %s2049_s27, %s2049_s27, %s2050_s28  }
  0x11   :  { %2046 = dma.done.wait [#allocation4], 8192  }
  0x12   :  { %2047 = vsyncadd [#allocation4], 4294959104  ;;  %v2051_v0 = vmov 0   ;;  %v59_v1 = vld [vmem:[%s2351_s3] sm:$0xff]  ;;  %vm110_vm0 = vcmask 1043456   ;;  %v60_v4 = vld [vmem:[%s2351_s3 + $0x8] sm:$0xff] }
  0x13   :  { %167 = vmatprep.mubr.bf16.mxu1 %v2051_v0  ;;  %253 = vmatprep.mubr.bf16.mxu0 %v2051_v0  ;;  %v1617_v2 = vcombine.high %v59_v1, %v59_v1  ;;  %v1616_v3 = vcombine.low %v59_v1, %v59_v1  ;;  %v1619_v5 = vcombine.high %v60_v4, %v60_v4  ;;  %v62_v7 = vld [vmem:[%s2351_s3 + $0x18] sm:$0xff]  ;;  %v1911_v9 = vld [vmem:[%s2348_s0] sm:$0xff]   ;;  %vm106_vm1 = vcmask 64512   ;;  %v61_v12 = vld [vmem:[%s2351_s3 + $0x10] sm:$0xff] }
  0x14   :  { %v1618_v6 = vcombine.low %v60_v4, %v60_v4  ;;  %v1623_v11 = vcombine.high %v62_v7, %v62_v7  ;;  %v1621_v13 = vcombine.high %v61_v12, %v61_v12  ;;  %v1620_v14 = vcombine.low %v61_v12, %v61_v12  ;;  %v65_v15 = vld [vmem:[%s2352_s4 + $0x10] sm:$0xff]  ;;  %v63_v22 = vld [vmem:[%s2352_s4] sm:$0xff]  ;;  %v58_v33 = vld [vmem:[%s2349_s1 + $0x8] sm:$0xff] }
  0x15   :  { %1624 = vmatprep.subr.msk.bf16.mxu1 %vm110_vm0, %v1617_v2  ;;  %v112_v8 = vsel %vm110_vm0, %v1616_v3, 0  ;;  %v69_v16 = vld [vmem:[%s2352_s4 + $0x30] sm:$0xff]  ;;  %v1622_v21 = vcombine.low %v62_v7, %v62_v7  ;;  %v67_v23 = vld [vmem:[%s2352_s4 + $0x20] sm:$0xff]  ;;  %vm387_vm2 = vcmask 261120   ;;  %v64_v35 = vld [vmem:[%s2352_s4 + $0x8] sm:$0xff] }
  0x16   :  { %136 = vmatpush1.bf16.msra.mxu1 %v112_v8  ;;  %v118_v10 = vsel %vm110_vm0, %v1618_v6, 0  ;;  %v73_v17 = vld [vmem:[%s2352_s4 + $0x50] sm:$0xff]  ;;  %v124_v18 = vsel %vm110_vm0, %v1620_v14, 0  ;;  %v1637_v19 = vcombine.high %v65_v15, %v69_v16  ;;  %1628 = vmatprep.subr.msk.bf16.mxu0 %vm110_vm0, %v1621_v13  ;;  %v1636_v24 = vcombine.low %v65_v15, %v69_v16  ;;  %v1918_v29 = vld [vmem:[#allocation3 + $0x40] sm:$0xff]   ;;  %v68_v36 = vld [vmem:[%s2352_s4 + $0x28] sm:$0xff] }
  0x17   :  { %1626 = vmatprep.subr.msk.bf16.mxu1 %vm110_vm0, %v1619_v5  ;;  %v77_v20 = vld [vmem:[%s2352_s4 + $0x70] sm:$0xff]  ;;  %222 = vmatpush1.bf16.msra.mxu0 %v124_v18  ;;  %v130_v26 = vsel %vm110_vm0, %v1622_v21, 0  ;;  %v1633_v27 = vcombine.high %v63_v22, %v67_v23  ;;  %v71_v30 = vld [vmem:[%s2352_s4 + $0x40] sm:$0xff]  ;;  %v1632_v34 = vcombine.low %v63_v22, %v67_v23  ;;  %v1920_v39 = vld [vmem:[#allocation3 + $0x48] sm:$0xff]   ;;  %v1635_v45 = vcombine.high %v64_v35, %v68_v36 }
  0x18   :  { %477 = vmatprep.subr.bf16.mxu0 %v1637_v19  ;;  %v1645_v25 = vcombine.high %v73_v17, %v77_v20  ;;  %v1644_v28 = vcombine.low %v73_v17, %v77_v20  ;;  %v75_v31 = vld [vmem:[%s2352_s4 + $0x60] sm:$0xff]  ;;  %v72_v42 = vld [vmem:[%s2352_s4 + $0x48] sm:$0xff]  ;;  %v1922_v46 = vld [vmem:[#allocation3 + $0x50] sm:$0xff]   ;;  %v1634_v47 = vcombine.low %v64_v35, %v68_v36  ;;  %v564_v23 = vlaneseq }
  0x19   :  { %1625 = vmatmul.mubr.msk.bf16.vlgmr.msra.gmra.mrb[0].mxu1 %vm106_vm1, %v1911_v9  ;;  %v57_v32 = vld [vmem:[%s2349_s1] sm:$0xff]  ;;  %v1641_v38 = vcombine.high %v71_v30, %v75_v31  ;;  %v1640_v41 = vcombine.low %v71_v30, %v75_v31  ;;  %v76_v43 = vld [vmem:[%s2352_s4 + $0x68] sm:$0xff]  ;;  %v66_v48 = vld [vmem:[%s2352_s4 + $0x18] sm:$0xff] }
  0x1a   :  { %179 = vmatpush1.bf16.msra.mxu1 %v118_v10  ;;  %210 = vmatprep.mubr.bf16.mxu1 %v2051_v0  ;;  %v1919_v37 = vld [vmem:[#allocation3] sm:$0xff]   ;;  %v80_v40 = vpack.c.bf16 %v58_v33, %v57_v32  ;;  %v1921_v44 = vld [vmem:[#allocation3 + $0x8] sm:$0xff]   ;;  %v70_v49 = vld [vmem:[%s2352_s4 + $0x38] sm:$0xff]  ;;  %v1643_v51 = vcombine.high %v72_v42, %v76_v43  ;;  %v1642_v53 = vcombine.low %v72_v42, %v76_v43 }
  0x1b   :  { %1630 = vmatprep.subr.msk.bf16.mxu1 %vm110_vm0, %v1623_v11  ;;  %1629 = vmatmul.mubr.msk.bf16.vlgmr.msra.gmra.mrb[0].mxu0 %vm106_vm1, %v1911_v9  ;;  %v1924_v50 = vld [vmem:[#allocation3 + $0x10] sm:$0xff]   ;;  %v1926_v52 = vld [vmem:[#allocation3 + $0x58] sm:$0xff]   ;;  %v1639_v56 = vcombine.high %v66_v48, %v70_v49  ;;  %v1638_v57 = vcombine.low %v66_v48, %v70_v49  ;;  %v1923_v59 = vld [vmem:[#allocation3 + $0xc0] sm:$0xff]  }
  0x1c   :  { %478 = vmatpush1.bf16.msra.mxu0 %v1636_v24  ;;  %509 = vmatprep.mubr.bf16.mxu0 %v2051_v0  ;;  %v74_v54 = vld [vmem:[%s2352_s4 + $0x58] sm:$0xff]  ;;  %v1925_v61 = vld [vmem:[#allocation3 + $0x80] sm:$0xff]   ;;  %v1927_v62 = vld [vmem:[#allocation3 + $0xc8] sm:$0xff]   ;;  %v565_v24 = vshrl.u32 %v564_v23, 7 }
  0x1d   :  { %479 = vmatprep.subr.bf16.mxu0 %v1645_v25  ;;  %v78_v55 = vld [vmem:[%s2352_s4 + $0x78] sm:$0xff]  ;;  %v1929_v1 = vld [vmem:[#allocation3 + $0x88] sm:$0xff]   ;;  %v1930_v2 = vld [vmem:[#allocation3 + $0x60] sm:$0xff]  }
  0x1e   :  { %v1647_v58 = vcombine.high %v74_v54, %v78_v55  ;;  %v1646_v60 = vcombine.low %v74_v54, %v78_v55  ;;  %v1928_v63 = vld [vmem:[#allocation3 + $0x18] sm:$0xff]   ;;  %v1931_v3 = vld [vmem:[#allocation3 + $0xd0] sm:$0xff]   ;;  %v1932_v4 = vld [vmem:[#allocation3 + $0x20] sm:$0xff]   ;;  %v582_v25 = vsub.s32 4, %v565_v24  ;;  %v566_v30 = vsub.s32 0, %v565_v24 }
  0x1f   :  { %v1933_v5 = vld [vmem:[#allocation3 + $0x90] sm:$0xff]   ;;  %v1935_v6 = vld [vmem:[#allocation3 + $0xd8] sm:$0xff]   ;;  %v1936_v7 = vld [vmem:[#allocation3 + $0x28] sm:$0xff]   ;;  %v570_v31 = vsub.s32 1, %v565_v24  ;;  %v578_v48 = vsub.s32 3, %v565_v24 }
  0x20   :  { %480 = vmatpush1.bf16.msra.mxu0 %v1644_v28  ;;  %v1937_v8 = vld [vmem:[#allocation3 + $0x98] sm:$0xff]   ;;  %v1939_v10 = vld [vmem:[#allocation3 + $0xe0] sm:$0xff]   ;;  %v1940_v11 = vld [vmem:[#allocation3 + $0x30] sm:$0xff]  }
  0x21   :  { %1627 = vmatmul.mubr.msk.bf16.vlgmr.msra.gmra.mrb[4].mxu1 %vm106_vm1, %v1911_v9  ;;  %1729 = vmatprep.subr.bf16.mxu0 %v1918_v29  ;;  %v1941_v12 = vld [vmem:[#allocation3 + $0xa0] sm:$0xff]   ;;  %v1942_v13 = vld [vmem:[#allocation3 + $0x78] sm:$0xff]   ;;  %v1943_v14 = vld [vmem:[#allocation3 + $0xe8] sm:$0xff]  }
  0x22   :  { %265 = vmatpush1.bf16.msra.mxu1 %v130_v26  ;;  %296 = vmatprep.mubr.bf16.mxu1 %v2051_v0  ;;  %v1944_v15 = vld [vmem:[#allocation3 + $0x38] sm:$0xff]   ;;  %v1945_v16 = vld [vmem:[#allocation3 + $0xa8] sm:$0xff]   ;;  %v1946_v17 = vld [vmem:[#allocation3 + $0xf0] sm:$0xff]   ;;  %v586_v26 = vsub.s32 5, %v565_v24 }
  0x23   :  { %391 = vmatprep.subr.bf16.mxu1 %v1633_v27  ;;  %v1947_v18 = vld [vmem:[#allocation3 + $0x140] sm:$0xff]   ;;  %v1948_v19 = vld [vmem:[#allocation3 + $0xb0] sm:$0xff]   ;;  %v1950_v20 = vld [vmem:[#allocation3 + $0xf8] sm:$0xff]  }
  0x24   :  { %v1952_v21 = vld [vmem:[#allocation3 + $0xb8] sm:$0xff]   ;;  %v1955_v22 = vld [vmem:[#allocation3 + $0x1c0] sm:$0xff]   ;;  %v1951_v23 = vld [vmem:[#allocation3 + $0x148] sm:$0xff]  }
  0x25   :  { %v79_v27 = vld [vmem:[%s2353_s5] sm:$0xff] }
  0x26   :  { %v583_v28 = vrot.slane %v79_v27, %v582_v25  ;;  %v587_v29 = vrot.slane %v79_v27, %v586_v26 }
  0x27   :  { %1650 = vmatmul.mubr.msk.bf16.vlgmr.msra.gmra.mrb[0].mxu0 %vm387_vm2, %v80_v40 }
  0x28   :  { %1730 = vmatpush3.bf16.msra.mxu0 %v1919_v37  ;;  %v567_v37 = vrot.slane %v79_v27, %v566_v30  ;;  %v660_v30 = vld [vmem:[%s2350_s2 + $0x40] sm:$0xff] }
  0x29   :  { %1631 = vmatmul.mubr.msk.bf16.vlgmr.msra.gmra.mrb[8].mxu1 %vm106_vm1, %v1911_v9  ;;  %1731 = vmatprep.subr.bf16.mxu0 %v1920_v39  ;;  %v1938_v9 = vld [vmem:[#allocation3 + $0x70] sm:$0xff]  }
  0x2a   :  { %392 = vmatpush1.bf16.msra.mxu1 %v1632_v34  ;;  %423 = vmatprep.mubr.bf16.mxu1 %v2051_v0 }
  0x2b   :  { %393 = vmatprep.subr.bf16.mxu1 %v1641_v38 }
  0x2c   :  { %1732 = vmatpush3.bf16.msra.mxu0 %v1921_v44 }
  0x2d   :  { %1733 = vmatprep.subr.bf16.mxu0 %v1922_v46 }
  0x2e   :  { %394 = vmatpush1.bf16.msra.mxu1 %v1640_v41 }
  0x2f   :  { %434 = vmatprep.subr.bf16.mxu1 %v1635_v45  ;;  %v574_v45 = vsub.s32 2, %v565_v24 }
  0x30   :  { %1734 = vmatpush3.bf16.msra.mxu0 %v1924_v50 }
  0x31   :  { %1648 = vmatmul.mubr.msk.bf16.vlgmr.msra.gmra.mrb[0].mxu1 %vm387_vm2, %v80_v40  ;;  %1735 = vmatprep.subr.bf16.mxu0 %v1926_v52  ;;  %v575_v52 = vrot.slane %v79_v27, %v574_v45  ;;  %v1960_v45 = vld [vmem:[#allocation3 + $0x118] sm:$0xff]  }
  0x32   :  { %435 = vmatpush1.bf16.msra.mxu1 %v1634_v47  ;;  %466 = vmatprep.mubr.bf16.mxu1 %v2051_v0 }
  0x33   :  { %436 = vmatprep.subr.bf16.mxu1 %v1643_v51 }
  0x34   :  { %1736 = vmatpush3.bf16.msra.mxu0 %v1928_v63 }
  0x35   :  { %1737 = vmatprep.subr.bf16.mxu0 %v1930_v2 }
  0x36   :  { %437 = vmatpush1.bf16.msra.mxu1 %v1642_v53  ;;  %v579_v53 = vrot.slane %v79_v27, %v578_v48  ;;  %v654_v48 = vld [vmem:[%s2350_s2 + $0x10] sm:$0xff] }
  0x37   :  { %520 = vmatprep.subr.bf16.mxu1 %v1639_v56 }
  0x38   :  { %1738 = vmatpush3.bf16.msra.mxu0 %v1932_v4 }
  0x39   :  { %1649 = vmatmul.mubr.msk.bf16.vlgmr.msra.gmra.mrb[4].mxu1 %vm387_vm2, %v80_v40 }
  0x3a   :  { %521 = vmatpush1.bf16.msra.mxu1 %v1638_v57  ;;  %552 = vmatprep.mubr.bf16.mxu1 %v2051_v0  ;;  %v1934_v0 = vld [vmem:[#allocation3 + $0x68] sm:$0xff]  }
  0x3b   :  { %522 = vmatprep.subr.bf16.mxu1 %v1647_v58  ;;  %1739 = vmatprep.subr.bf16.mxu0 %v1934_v0 }
  0x3c   :  { %1740 = vmatpush3.bf16.msra.mxu0 %v1936_v7 }
  0x3d   :  { %1741 = vmatprep.subr.bf16.mxu0 %v1938_v9 }
  0x3e   :  { %523 = vmatpush1.bf16.msra.mxu1 %v1646_v60  ;;  %v590_v60 = vsub.s32 6, %v565_v24 }
  0x3f   :  { %1757 = vmatprep.subr.bf16.mxu1 %v1923_v59 }
  0x40   :  { %1742 = vmatpush3.bf16.msra.mxu0 %v1940_v11  ;;  %v591_v7 = vrot.slane %v79_v27, %v590_v60  ;;  %v661_v11 = vld [vmem:[%s2350_s2 + $0x48] sm:$0xff]  ;;  %v1964_v60 = vld [vmem:[#allocation3 + $0x120] sm:$0xff]  }
  0x41   :  { %1651 = vmatmul.mubr.msk.bf16.vlgmr.msra.gmra.mrb[8].mxu1 %vm387_vm2, %v80_v40  ;;  %1743 = vmatprep.subr.bf16.mxu0 %v1942_v13  ;;  %v571_v40 = vrot.slane %v79_v27, %v570_v31 }
  0x42   :  { %1758 = vmatpush3.bf16.msra.mxu1 %v1925_v61 }
  0x43   :  { %1759 = vmatprep.subr.bf16.mxu1 %v1927_v62 }
  0x44   :  { %1744 = vmatpush3.bf16.msra.mxu0 %v1944_v15 }
  0x45   :  { %1785 = vmatprep.subr.bf16.mxu0 %v1947_v18 }
  0x46   :  { %1760 = vmatpush3.bf16.msra.mxu1 %v1929_v1  ;;  %v594_v1 = vsub.s32 7, %v565_v24 }
  0x47   :  { %1761 = vmatprep.subr.bf16.mxu1 %v1931_v3 }
  0x48   :  { %v595_v9 = vrot.slane %v79_v27, %v594_v1  ;;  %v1966_v1 = vld [vmem:[#allocation3 + $0x168] sm:$0xff]  }
  0x4a   :  { %1762 = vmatpush3.bf16.msra.mxu1 %v1933_v5 }
  0x4b   :  { %1763 = vmatprep.subr.bf16.mxu1 %v1935_v6 }
  0x4e   :  { %1764 = vmatpush3.bf16.msra.mxu1 %v1937_v8 }
  0x4f   :  { %1765 = vmatprep.subr.bf16.mxu1 %v1939_v10  ;;  %v653_v10 = vld [vmem:[%s2350_s2 + $0x8] sm:$0xff] }
  0x52   :  { %1766 = vmatpush3.bf16.msra.mxu1 %v1941_v12 }
  0x53   :  { %1767 = vmatprep.subr.bf16.mxu1 %v1943_v14 }
  0x56   :  { %1768 = vmatpush3.bf16.msra.mxu1 %v1945_v16 }
  0x57   :  { %1769 = vmatprep.subr.bf16.mxu1 %v1946_v17 }
  0x5a   :  { %1770 = vmatpush3.bf16.msra.mxu1 %v1948_v19  ;;  %v1949_v19 = vld [vmem:[#allocation3 + $0x100] sm:$0xff]  }
  0x5b   :  { %1771 = vmatprep.subr.bf16.mxu1 %v1950_v20  ;;  %v669_v20 = vpack.c.bf16 %v661_v11, %v653_v10  ;;  %v1977_v10 = vld [vmem:[#allocation3 + $0x1a8] sm:$0xff]   ;;  %v1978_v11 = vld [vmem:[#allocation3 + $0x1f0] sm:$0xff]  }
  0x5e   :  { %1772 = vmatpush3.bf16.msra.mxu1 %v1952_v21 }
  0x5f   :  { %1813 = vmatprep.subr.bf16.mxu1 %v1955_v22 }
  0xfa   :  { %v511_v32 = vpop.f32.mrb[0].mxu0 }
  0xfb   :  { %v608_v33 = vadd.f32 %v583_v28, %v511_v32  ;;  %v513_v34 = vpop.f32.mrb[1].mxu0  ;;  %v1954_v32 = vld [vmem:[#allocation3 + $0x150] sm:$0xff]  }
  0xfc   :  { %v609_v35 = vadd.f32 %v587_v29, %v513_v34  ;;  %v515_v36 = vpop.f32.mrb[2].mxu0 }
  0xfd   :  { %1991 = vtanh.f32 %v608_v33  ;;  %v616_v38 = vadd.f32 %v583_v28, %v515_v36  ;;  %v517_v39 = vpop.f32.mrb[3].mxu0  ;;  %v1953_v28 = vld [vmem:[#allocation3 + $0x108] sm:$0xff]   ;;  %v655_v36 = vld [vmem:[%s2350_s2 + $0x18] sm:$0xff] }
  0xfe   :  { %1993 = vtanh.f32 %v609_v35  ;;  %v617_v41 = vadd.f32 %v587_v29, %v517_v39  ;;  %v652_v29 = vld [vmem:[%s2350_s2] sm:$0xff] }
  0xff   :  { %1995 = vtanh.f32 %v616_v38  ;;  %v668_v38 = vpack.c.bf16 %v660_v30, %v652_v29  ;;  %v1987_v29 = vld [vmem:[%s2356_s8 + $0x28] sm:$0xff]   ;;  %v1988_v30 = vld [vmem:[%s2356_s8 + $0x30] sm:$0xff]  }
 0x100   :  { %1997 = vtanh.f32 %v617_v41  ;;  %v1957_v41 = vld [vmem:[#allocation3 + $0x180] sm:$0xff]  }
 0x104   :  { %v425_v42 = vpop.f32.mrb[0].mxu1 }
 0x105   :  { %v604_v43 = vadd.f32 %v567_v37, %v425_v42  ;;  %v427_v44 = vpop.f32.mrb[1].mxu1  ;;  %v1958_v42 = vld [vmem:[#allocation3 + $0x158] sm:$0xff]  }
 0x106   :  { %v605_v46 = vadd.f32 %v571_v40, %v427_v44  ;;  %v429_v47 = vpop.f32.mrb[2].mxu1 }
 0x107   :  { %1999 = vtanh.f32 %v604_v43  ;;  %v612_v49 = vadd.f32 %v567_v37, %v429_v47  ;;  %v431_v50 = vpop.f32.mrb[3].mxu1  ;;  %v2220_v54 = vpop.eup %1991  ;;  %v663_v37 = vld [vmem:[%s2350_s2 + $0x58] sm:$0xff]  ;;  %v1959_v43 = vld [vmem:[#allocation3 + $0x1c8] sm:$0xff]  }
 0x108   :  { %2001 = vtanh.f32 %v605_v46  ;;  %v613_v51 = vadd.f32 %v571_v40, %v431_v50  ;;  %v2222_v55 = vpop.eup %1993  ;;  %v1956_v40 = vld [vmem:[#allocation3 + $0x110] sm:$0xff]   ;;  %v671_v44 = vpack.c.bf16 %v663_v37, %v655_v36  ;;  %v1961_v47 = vld [vmem:[#allocation3 + $0x188] sm:$0xff]  }
 0x109   :  { %2003 = vtanh.f32 %v612_v49  ;;  %v2224_v57 = vpop.eup %1995  ;;  %v662_v49 = vld [vmem:[%s2350_s2 + $0x50] sm:$0xff] }
 0x10a   :  { %2005 = vtanh.f32 %v613_v51  ;;  %v2226_v61 = vpop.eup %1997  ;;  %v640_v2 = vpack.c.bf16 %v2224_v57, %v2220_v54  ;;  %v1962_v51 = vld [vmem:[#allocation3 + $0x160] sm:$0xff]   ;;  %v667_v54 = vld [vmem:[%s2350_s2 + $0x78] sm:$0xff] }
 0x10b   :  { %v641_v5 = vpack.c.bf16 %v2226_v61, %v2222_v55  ;;  %v1970_v55 = vld [vmem:[#allocation3 + $0x170] sm:$0xff]   ;;  %v1971_v61 = vld [vmem:[#allocation3 + $0x1e0] sm:$0xff]  }
 0x10c   :  { %v468_v56 = vpop.f32.mrb[4].mxu1 }
 0x10d   :  { %v606_v58 = vadd.f32 %v575_v52, %v468_v56  ;;  %v470_v59 = vpop.f32.mrb[5].mxu1 }
 0x10e   :  { %v607_v62 = vadd.f32 %v579_v53, %v470_v59  ;;  %v472_v63 = vpop.f32.mrb[6].mxu1 }
 0x10f   :  { %2007 = vtanh.f32 %v606_v58  ;;  %v614_v3 = vadd.f32 %v575_v52, %v472_v63  ;;  %v474_v4 = vpop.f32.mrb[7].mxu1  ;;  %v1963_v52 = vld [vmem:[#allocation3 + $0x1d0] sm:$0xff]   ;;  %v670_v58 = vpack.c.bf16 %v662_v49, %v654_v48 }
 0x110   :  { %2009 = vtanh.f32 %v607_v62  ;;  %v615_v0 = vadd.f32 %v579_v53, %v474_v4  ;;  %v1965_v62 = vld [vmem:[#allocation3 + $0x190] sm:$0xff]   ;;  %v1968_v4 = vld [vmem:[#allocation3 + $0x128] sm:$0xff]  }
 0x111   :  { %v2000_v6 = vpop.eup %1999  ;;  %2011 = vtanh.f32 %v614_v3  ;;  %v1967_v3 = vld [vmem:[#allocation3 + $0x1d8] sm:$0xff]  }
 0x112   :  { %v2002_v8 = vpop.eup %2001  ;;  %2013 = vtanh.f32 %v615_v0  ;;  %v1969_v0 = vld [vmem:[#allocation3 + $0x198] sm:$0xff]  }
 0x113   :  { %v2004_v12 = vpop.eup %2003 }
 0x114   :  { %v2006_v13 = vpop.eup %2005  ;;  %v554_v14 = vpop.f32.mrb[8].mxu1  ;;  %v636_v15 = vpack.c.bf16 %v2004_v12, %v2000_v6  ;;  %v1973_v6 = vld [vmem:[#allocation3 + $0x1a0] sm:$0xff]   ;;  %v657_v12 = vld [vmem:[%s2350_s2 + $0x28] sm:$0xff] }
 0x115   :  { %v610_v16 = vadd.f32 %v591_v7, %v554_v14  ;;  %v556_v17 = vpop.f32.mrb[9].mxu1  ;;  %v637_v18 = vpack.c.bf16 %v2006_v13, %v2002_v8  ;;  %v1975_v8 = vld [vmem:[#allocation3 + $0x1e8] sm:$0xff]   ;;  %v1979_v14 = vld [vmem:[#allocation3 + $0x1b0] sm:$0xff]  }
 0x116   :  { %v611_v21 = vadd.f32 %v595_v9, %v556_v17  ;;  %v558_v22 = vpop.f32.mrb[10].mxu1  ;;  %v665_v13 = vld [vmem:[%s2350_s2 + $0x68] sm:$0xff]  ;;  %v1981_v17 = vld [vmem:[#allocation3 + $0x1b8] sm:$0xff]  }
 0x117   :  { %2015 = vtanh.f32 %v610_v16  ;;  %v618_v24 = vadd.f32 %v591_v7, %v558_v22  ;;  %v560_v25 = vpop.f32.mrb[11].mxu1  ;;  %1269 = vmatprep.mubr.bf16.mxu0 %v637_v18  ;;  %v1974_v7 = vld [vmem:[#allocation3 + $0x178] sm:$0xff]   ;;  %v656_v18 = vld [vmem:[%s2350_s2 + $0x20] sm:$0xff]  ;;  %v666_v22 = vld [vmem:[%s2350_s2 + $0x70] sm:$0xff] }
 0x118   :  { %2017 = vtanh.f32 %v611_v21  ;;  %v619_v26 = vadd.f32 %v595_v9, %v560_v25  ;;  %1270 = vmatmul.mubr.bf16.vlgmr.msra.gmra.mrb[4].mxu0 %v636_v15  ;;  %v1976_v9 = vld [vmem:[#allocation3 + $0x138] sm:$0xff]   ;;  %v673_v15 = vpack.c.bf16 %v665_v13, %v657_v12  ;;  %v658_v21 = vld [vmem:[%s2350_s2 + $0x30] sm:$0xff]  ;;  %v1983_v25 = vld [vmem:[%s2356_s8 + $0x8] sm:$0xff]  }
 0x119   :  { %v2008_v27 = vpop.eup %2007  ;;  %2019 = vtanh.f32 %v618_v24  ;;  %1786 = vmatpush3.bf16.msra.mxu0 %v1949_v19  ;;  %1277 = vmatprep.mubr.bf16.mxu0 %v669_v20  ;;  %v1980_v16 = vld [vmem:[#allocation3 + $0x1f8] sm:$0xff]   ;;  %v664_v19 = vld [vmem:[%s2350_s2 + $0x60] sm:$0xff] }
 0x11a   :  { %v2010_v31 = vpop.eup %2009  ;;  %2021 = vtanh.f32 %v619_v26  ;;  %1787 = vmatprep.subr.bf16.mxu0 %v1951_v23  ;;  %v659_v20 = vld [vmem:[%s2350_s2 + $0x38] sm:$0xff]  ;;  %v672_v57 = vpack.c.bf16 %v664_v19, %v656_v18  ;;  %v674_v23 = vpack.c.bf16 %v666_v22, %v658_v21  ;;  %v1982_v24 = vld [vmem:[%s2356_s8] sm:$0xff]   ;;  %v1984_v26 = vld [vmem:[%s2356_s8 + $0x10] sm:$0xff]  }
 0x11b   :  { %v2012_v33 = vpop.eup %2011 }
 0x11c   :  { %v2014_v34 = vpop.eup %2013  ;;  %v638_v35 = vpack.c.bf16 %v2012_v33, %v2008_v27  ;;  %v1985_v27 = vld [vmem:[%s2356_s8 + $0x18] sm:$0xff]  }
 0x11d   :  { %1788 = vmatpush3.bf16.msra.mxu0 %v1953_v28  ;;  %v639_v39 = vpack.c.bf16 %v2014_v34, %v2010_v31  ;;  %v1986_v28 = vld [vmem:[%s2356_s8 + $0x20] sm:$0xff]   ;;  %v1989_v31 = vld [vmem:[%s2356_s8 + $0x38] sm:$0xff]  }
 0x11e   :  { %1789 = vmatprep.subr.bf16.mxu0 %v1954_v32  ;;  %v2316_v32 = vld [vmem:[%s2358_s10] sm:$0xf] }
 0x11f   :  { %1318 = vmatprep.mubr.bf16.mxu1 %v639_v39  ;;  %v1652_v39 = vld [vmem:[%s2355_s7] ss:$0 sm:$0xff] }
 0x120   :  { %1319 = vmatmul.mubr.bf16.vlgmr.msra.gmra.mrb[12].mxu1 %v638_v35  ;;  %1278 = vmatmul.mubr.bf16.gmra.mrb[8].mxu0 %v668_v38 }
 0x121   :  { %v2250_v46 = vpop.eup %2015  ;;  %1790 = vmatpush3.bf16.msra.mxu0 %v1956_v40  ;;  %1814 = vmatpush3.bf16.msra.mxu1 %v1957_v41 }
 0x122   :  { %v2018_v50 = vpop.eup %2017  ;;  %1791 = vmatprep.subr.bf16.mxu0 %v1958_v42  ;;  %1815 = vmatprep.subr.bf16.mxu1 %v1959_v43 }
 0x123   :  { %v2020_v53 = vpop.eup %2019  ;;  %1326 = vmatprep.mubr.bf16.mxu1 %v671_v44  ;;  %1367 = vmatprep.mubr.bf16.mxu0 %v641_v5  ;;  %v1972_v5 = vld [vmem:[#allocation3 + $0x130] sm:$0xff]  }
 0x124   :  { %v2022_v56 = vpop.eup %2021  ;;  %v642_v59 = vpack.c.bf16 %v2020_v53, %v2250_v46 }
 0x125   :  { %1792 = vmatpush3.bf16.msra.mxu0 %v1960_v45  ;;  %1816 = vmatpush3.bf16.msra.mxu1 %v1961_v47  ;;  %v643_v63 = vpack.c.bf16 %v2022_v56, %v2018_v50 }
 0x126   :  { %1793 = vmatprep.subr.bf16.mxu0 %v1962_v51  ;;  %1817 = vmatprep.subr.bf16.mxu1 %v1963_v52 }
 0x128   :  { %1327 = vmatmul.mubr.bf16.gmra.mrb[16].mxu1 %v670_v58 }
 0x129   :  { %1794 = vmatpush3.bf16.msra.mxu0 %v1964_v60  ;;  %1818 = vmatpush3.bf16.msra.mxu1 %v1965_v62 }
 0x12a   :  { %1416 = vmatprep.mubr.bf16.mxu1 %v643_v63  ;;  %1795 = vmatprep.subr.bf16.mxu0 %v1966_v1 }
 0x12b   :  { %1819 = vmatprep.subr.bf16.mxu1 %v1967_v3 }
 0x12d   :  { %1796 = vmatpush3.bf16.msra.mxu0 %v1968_v4  ;;  %1820 = vmatpush3.bf16.msra.mxu1 %v1969_v0 }
 0x12e   :  { %1797 = vmatprep.subr.bf16.mxu0 %v1970_v55  ;;  %1821 = vmatprep.subr.bf16.mxu1 %v1971_v61 }
 0x131   :  { %1798 = vmatpush3.bf16.msra.mxu0 %v1972_v5  ;;  %1822 = vmatpush3.bf16.msra.mxu1 %v1973_v6 }
 0x132   :  { %1799 = vmatprep.subr.bf16.mxu0 %v1974_v7  ;;  %1823 = vmatprep.subr.bf16.mxu1 %v1975_v8 }
 0x135   :  { %1800 = vmatpush3.bf16.msra.mxu0 %v1976_v9  ;;  %1824 = vmatpush3.bf16.msra.mxu1 %v1977_v10 }
 0x136   :  { %1825 = vmatprep.subr.bf16.mxu1 %v1978_v11  ;;  %1854 = vmatprep.subr.bf16.mxu0 %v1982_v24 }
 0x138   :  { %1368 = vmatmul.mubr.bf16.vlgmr.msra.gmra.mrb[12].mxu0 %v640_v2  ;;  %v675_v2 = vpack.c.bf16 %v667_v54, %v659_v20 }
 0x139   :  { %1826 = vmatpush3.bf16.msra.mxu1 %v1979_v14  ;;  %1375 = vmatprep.mubr.bf16.mxu0 %v673_v15 }
 0x13a   :  { %1827 = vmatprep.subr.bf16.mxu1 %v1980_v16  ;;  %1855 = vmatpush3.bf16.msra.mxu0 %v1982_v24 }
 0x13b   :  { %1856 = vmatprep.subr.bf16.mxu0 %v1983_v25 }
 0x13d   :  { %1828 = vmatpush3.bf16.msra.mxu1 %v1981_v17 }
 0x13e   :  { %1857 = vmatpush3.bf16.msra.mxu0 %v1983_v25 }
 0x13f   :  { %1858 = vmatprep.subr.bf16.mxu0 %v1984_v26 }
 0x140   :  { %1376 = vmatmul.mubr.bf16.gmra.mrb[16].mxu0 %v672_v57  ;;  %1417 = vmatmul.mubr.bf16.vlgmr.msra.gmra.mrb[20].mxu1 %v642_v59 }
 0x141   :  { %1424 = vmatprep.mubr.bf16.mxu1 %v675_v2 }
 0x142   :  { %1859 = vmatpush3.bf16.msra.mxu0 %v1984_v26 }
 0x143   :  { %1860 = vmatprep.subr.bf16.mxu0 %v1985_v27 }
 0x146   :  { %1861 = vmatpush3.bf16.msra.mxu0 %v1985_v27 }
 0x147   :  { %1862 = vmatprep.subr.bf16.mxu0 %v1986_v28 }
 0x148   :  { %1425 = vmatmul.mubr.bf16.gmra.mrb[24].mxu1 %v674_v23 }
 0x14a   :  { %1863 = vmatpush3.bf16.msra.mxu0 %v1986_v28 }
 0x14b   :  { %1864 = vmatprep.subr.bf16.mxu0 %v1987_v29 }
 0x14e   :  { %1865 = vmatpush3.bf16.msra.mxu0 %v1987_v29 }
 0x14f   :  { %1866 = vmatprep.subr.bf16.mxu0 %v1988_v30 }
 0x152   :  { %1867 = vmatpush3.bf16.msra.mxu0 %v1988_v30 }
 0x153   :  { %1868 = vmatprep.subr.bf16.mxu0 %v1989_v31 }
 0x156   :  { %1869 = vmatpush3.bf16.msra.mxu0 %v1989_v31 }
 0x157   :  { %1904 = vmatprep.subr.msk.bf16.mxu0 %vm110_vm0, %v2316_v32 }
 0x1eb   :  { %v1745_v33 = vpop.f32.mrb[4].mxu0 }
 0x1ec   :  { %v1746_v34 = vpop.f32.mrb[5].mxu0 }
 0x1ed   :  { %v1747_v35 = vadd.f32 %v1746_v34, %v1745_v33  ;;  %v1748_v36 = vpop.f32.mrb[6].mxu0 }
 0x1ee   :  { %v1749_v37 = vpop.f32.mrb[7].mxu0 }
 0x1ef   :  { %v1750_v38 = vadd.f32 %v1749_v37, %v1748_v36  ;;  %v1272_v44 = vadd.f32 %v1747_v35, %v1652_v39 }
 0x1f1   :  { %v1275_v51 = vadd.f32 %v1750_v38, %v1652_v39 }
 0x1f3   :  { %v1773_v40 = vpop.f32.mrb[12].mxu1  ;;  %v1751_v41 = vpop.f32.mrb[8].mxu0 }
 0x1f4   :  { %v1774_v42 = vpop.f32.mrb[13].mxu1  ;;  %v1752_v43 = vpop.f32.mrb[9].mxu0 }
 0x1f5   :  { %v1775_v45 = vadd.f32 %v1774_v42, %v1773_v40  ;;  %v1776_v46 = vpop.f32.mrb[14].mxu1  ;;  %v1753_v47 = vadd.f32 %v1752_v43, %v1751_v41  ;;  %v1754_v48 = vpop.f32.mrb[10].mxu0  ;;  %v1551_v41 = vsel %vm110_vm0, %v2316_v32, 0  ;;  %v2023_v42 = vld [vmem:[%s2348_s0] sm:$0xff]   ;;  %v1990_v43 = vld [vmem:[%s2348_s0 + $0x8] sm:$0xff]  }
 0x1f6   :  { %v1777_v49 = vpop.f32.mrb[15].mxu1  ;;  %v1755_v50 = vpop.f32.mrb[11].mxu0 }
 0x1f7   :  { %v1321_v52 = vadd.f32 %v1775_v45, %v1272_v44  ;;  %v1778_v53 = vadd.f32 %v1777_v49, %v1776_v46  ;;  %v1756_v56 = vadd.f32 %v1755_v50, %v1754_v48  ;;  %v1280_v59 = vadd.f32 %v1753_v47, %v1652_v39  ;;  %v1717_v44 = vld [vmem:[%s2357_s9] ss:$0 sm:$0xff] }
 0x1f9   :  { %v1324_v58 = vadd.f32 %v1778_v53, %v1275_v51  ;;  %v1283_v63 = vadd.f32 %v1756_v56, %v1652_v39 }
 0x1fb   :  { %v1779_v60 = vpop.f32.mrb[16].mxu1 }
 0x1fc   :  { %v1780_v62 = vpop.f32.mrb[17].mxu1 }
 0x1fd   :  { %v1781_v1 = vadd.f32 %v1780_v62, %v1779_v60  ;;  %v1782_v3 = vpop.f32.mrb[18].mxu1 }
 0x1fe   :  { %v1783_v4 = vpop.f32.mrb[19].mxu1 }
 0x1ff   :  { %v1329_v0 = vadd.f32 %v1781_v1, %v1280_v59  ;;  %v1784_v55 = vadd.f32 %v1783_v4, %v1782_v3 }
 0x201   :  { %v1332_v61 = vadd.f32 %v1784_v55, %v1283_v63 }
 0x20b   :  { %v1801_v5 = vpop.f32.mrb[12].mxu0 }
 0x20c   :  { %v1802_v6 = vpop.f32.mrb[13].mxu0 }
 0x20d   :  { %v1803_v7 = vadd.f32 %v1802_v6, %v1801_v5  ;;  %v1804_v8 = vpop.f32.mrb[14].mxu0 }
 0x20e   :  { %v1805_v9 = vpop.f32.mrb[15].mxu0 }
 0x20f   :  { %v1370_v10 = vadd.f32 %v1803_v7, %v1321_v52  ;;  %v1806_v11 = vadd.f32 %v1805_v9, %v1804_v8 }
 0x211   :  { %v1373_v12 = vadd.f32 %v1806_v11, %v1324_v58 }
 0x213   :  { %v1807_v13 = vpop.f32.mrb[16].mxu0  ;;  %v1829_v14 = vpop.f32.mrb[20].mxu1 }
 0x214   :  { %v1808_v15 = vpop.f32.mrb[17].mxu0  ;;  %v1830_v16 = vpop.f32.mrb[21].mxu1 }
 0x215   :  { %v1809_v17 = vadd.f32 %v1808_v15, %v1807_v13  ;;  %v1831_v18 = vadd.f32 %v1830_v16, %v1829_v14  ;;  %v1810_v19 = vpop.f32.mrb[18].mxu0  ;;  %v1832_v20 = vpop.f32.mrb[22].mxu1 }
 0x216   :  { %v1811_v54 = vpop.f32.mrb[19].mxu0  ;;  %v1833_v57 = vpop.f32.mrb[23].mxu1 }
 0x217   :  { %v1378_v2 = vadd.f32 %v1809_v17, %v1329_v0  ;;  %v1419_v21 = vadd.f32 %v1831_v18, %v1370_v10  ;;  %v1812_v22 = vadd.f32 %v1811_v54, %v1810_v19  ;;  %v1834_v23 = vadd.f32 %v1833_v57, %v1832_v20 }
 0x219   :  { %v1381_v24 = vadd.f32 %v1812_v22, %v1332_v61  ;;  %v1422_v25 = vadd.f32 %v1834_v23, %v1373_v12  ;;  %v1433_v26 = vmax.f32 %v1419_v21, 0.0 }
 0x21b   :  { %v1434_v27 = vmax.f32 %v1422_v25, 0.0  ;;  %v1835_v28 = vpop.f32.mrb[24].mxu1 }
 0x21c   :  { %v1836_v29 = vpop.f32.mrb[25].mxu1 }
 0x21d   :  { %v1837_v30 = vadd.f32 %v1836_v29, %v1835_v28  ;;  %v1838_v31 = vpop.f32.mrb[26].mxu1  ;;  %v1437_v33 = vpack.c.bf16 %v1434_v27, %v1433_v26 }
 0x21e   :  { %v1839_v34 = vpop.f32.mrb[27].mxu1 }
 0x21f   :  { %v1427_v35 = vadd.f32 %v1837_v30, %v1378_v2  ;;  %v1840_v36 = vadd.f32 %v1839_v34, %v1838_v31  ;;  %1870 = vmatprep.mubr.bf16.mxu0 %v1437_v33 }
 0x221   :  { %v1430_v37 = vadd.f32 %v1840_v36, %v1381_v24  ;;  %v1435_v38 = vmax.f32 %v1427_v35, 0.0 }
 0x223   :  { %v1436_v39 = vmax.f32 %v1430_v37, 0.0 }
 0x225   :  { %v1438_v40 = vpack.c.bf16 %v1436_v39, %v1435_v38 }
 0x227   :  { %1871 = vmatmul.mubr.bf16.vlgmr.msra.gmra.mrb[20].mxu0 %v1438_v40 }
 0x228   :  { %1875 = vmatpush3.bf16.msra.mxu0 %v1551_v41  ;;  %1876 = vmatprep.mubr.msk.bf16.mxu0 %vm106_vm1, %v2023_v42 }
 0x233   :  { %1877 = vmatmul.mubr.msk.bf16.vlgmr.msra.gmra.mrb[20].mxu0 %vm106_vm1, %v1990_v43 }
 0x306   :  { %v1878_v45 = vpop.f32.mrb[20].mxu0 }
 0x307   :  { %v1880_v32 = vadd.f32 %v1878_v45, %v1717_v44  ;;  %v1587_v46 = vpop.f32.mrb[21].mxu0 }
 0x308   :  { %v1881_v47 = vadd.f32 %v1717_v44, %v1587_v46  ;;  %v1879_v48 = vpop.f32.mrb[22].mxu0 }
 0x309   :  { %1608 = vst [vmem:[%s2359_s11 + $0x10] sm:$0xff] %v1880_v32  ;;  %v1882_v49 = vadd.f32 %v1879_v48, %v1717_v44  ;;  %v1590_v50 = vpop.f32.mrb[23].mxu0 }
 0x30a   :  { %1606 = vst [vmem:[%s2359_s11] sm:$0xff] %v1881_v47  ;;  %v1883_v51 = vadd.f32 %v1717_v44, %v1590_v50 }
 0x30b   :  { %1609 = vst [vmem:[%s2359_s11 + $0x18] sm:$0xff] %v1882_v49 }
 0x30c   :  { %1607 = vst [vmem:[%s2359_s11 + $0x8] sm:$0xff] %v1883_v51 }
 0x30d   :  { %1614 = vsyncpa [#allocation4], 1 }

</bundles_post_ra>
